<compile_context>
chip_gen: v7x
topology: tpu7x:2x2x1
jax: 0.10.0
libtpu: 0.0.40
codegen_flags: <defaults>
</compile_context>

<pallas_src>
from functools import partial

import jax
import jax.numpy as jnp
from jax.experimental import pallas as pl
from jax.experimental.pallas import tpu as pltpu

_LANES = 128
_VMEM_LIMIT_BYTES = 32 << 20   # <= scoped/physical VMEM on v5e, v6e and v7x
_BLOCK_BYTES_SMALL = 2 << 20   # per-input block: v5e / unknown chips
_BLOCK_BYTES_LARGE = 4 << 20   # per-input block: v6e / v7x


def _tpu_config():
    """(TensorCores to split the stream across, target per-input block bytes)."""
    kind = ""
    try:
        kind = (jax.devices()[0].device_kind or "").lower()
    except Exception:  # defensive: never let detection break the kernel
        pass
    if "v7" in kind:          # 2 TensorCores per chip, 3.2 TB/s HBM
        return 2, _BLOCK_BYTES_LARGE
    if "v6" in kind:          # 1 TensorCore, 32 MiB scoped VMEM default
        return 1, _BLOCK_BYTES_LARGE
    return 1, _BLOCK_BYTES_SMALL   # v5e / v4 / unknown: conservative


def _linex_kernel(o_ref, t_ref, part_ref, *, a, valid_rows, bpc,
                  two_core, needs_mask, acc_rows):
    # Grid: (core, reduction) when two_core, else (reduction,).
    if two_core:
        c = pl.program_id(0)
        i = pl.program_id(1)
    else:
        c = 0
        i = pl.program_id(0)
    tr = o_ref.shape[0]

    # P3 accumulator: zero this core's partial at the first reduction step.
    @pl.when(i == 0)
    def _():
        part_ref[...] = jnp.zeros_like(part_ref)

    # Cast in-kernel; inputs keep their (possibly bf16) HBM dtype.
    o = o_ref[...].astype(jnp.float32)
    t = t_ref[...].astype(jnp.float32)

    p = 1.0 + t
    m = 1.0 - t
    at = a * t
    v = at * o                 # a * t * o
    u = at - v                 # a * t * (1 - o)
    # (1+t)u + (1-t)v = a*t*(1 + t - 2*t*o) = at*(p - (2/a)*v)  [reuses v]
    if a != 0.0:
        poly = at * (p - (2.0 / a) * v)
    else:
        poly = at * (p - 2.0 * (t * o))   # degenerate a == 0 (loss is 0)
    # loss = (1+t)(e^u - u - 1) + (1-t)(e^v - v - 1) = p*e^u + m*e^v - (poly + 2)
    val = p * jnp.exp(u) + m * jnp.exp(v) - (poly + 2.0)

    def reduce_block(x):
        # (tr,128) -> (acc_rows,128) with acc_rows/8 independent vreg-add
        # chains (ILP); the final cross-lane reduce happens in the wrapper.
        return x.reshape(-1, acc_rows, _LANES).sum(axis=0)

    if not needs_mask:
        # Exact geometry: every block is fully valid (padded zeros, if any,
        # contribute exactly 0 to the loss).
        part_ref[...] += reduce_block(val)
    else:
        row_start = (c * bpc + i) * tr     # unclamped: duplicates mask to 0

        @pl.when(row_start + tr <= valid_rows)
        def _():                            # interior block: no mask cost
            part_ref[...] += reduce_block(val)

        @pl.when(row_start + tr > valid_rows)
        def _():                            # partial tail / clamped duplicate
            row_ids = row_start + jax.lax.broadcasted_iota(
                jnp.int32, val.shape, 0)
            part_ref[...] += reduce_block(
                jnp.where(row_ids < valid_rows, val, 0.0))


def linex_loss(output, target, a, *, block_rows=None):
    """Pallas implementation of LinexLoss.forward (returns scalar mean loss)."""
    a = float(a)
    assert output.shape == target.shape, "output/target shape mismatch"
    n = output.size
    itemsize = jnp.dtype(output.dtype).itemsize
    # dtype-aware sublane packing (rows per 32-bit vreg row): f32->8, bf16->16, 8-bit->32
    pack = {4: 8, 2: 16, 1: 32}.get(itemsize, 8)

    ncores_hw, blk_bytes = _tpu_config()

    o = output.reshape(-1)
    t = target.reshape(-1)

    # Round the flat length up to a (dtype-aware) vreg-aligned row count.
    # No-op (no copy) in the common aligned case; zero padding contributes 0.
    pad = (-n) % (pack * _LANES)
    if pad:
        # TODO(synk): fully ragged tails without jnp.pad would need a 1-D
        # layout path; the pad copy only triggers for unaligned n.
        o = jnp.pad(o, (0, pad))
        t = jnp.pad(t, (0, pad))
    rows = (n + pad) // _LANES

    if block_rows is None:
        block_rows = max(pack, blk_bytes // (_LANES * itemsize))
    tr = int(min(block_rows, rows))              # multiple of `pack` (>= 8)
    total_blocks = pl.cdiv(rows, tr)
    ncores = ncores_hw if total_blocks >= 2 else 1

    # Accumulator height: 32 rows (4 vregs -> 4-way add ILP) when possible.
    acc_rows = 32 if tr % 32 == 0 else (16 if tr % 16 == 0 else 8)

    o2 = o.reshape(rows, _LANES)
    t2 = t.reshape(rows, _LANES)

    def run(two_core):
        nc = 2 if two_core else 1
        bpc = pl.cdiv(total_blocks, nc)          # reduction steps per core
        needs_mask = (nc * bpc * tr != rows)     # partial tail or duplicates

        if two_core:
            grid = (2, bpc)

            def in_map(c, i):
                # Clamp so a core whose tail steps run past the data re-reads
                # the last block; its contribution masks to zero in-kernel.
                return (jnp.minimum(c * bpc + i, total_blocks - 1), 0)

            out_map = lambda c, i: (c, 0)
            sem = (pltpu.CORE_PARALLEL, pltpu.ARBITRARY)
        else:
            grid = (total_blocks,)
            in_map = lambda i: (i, 0)
            out_map = lambda i: (0, 0)
            sem = ("arbitrary",)

        in_spec = pl.BlockSpec((tr, _LANES), in_map)
        out_spec = pl.BlockSpec((acc_rows, _LANES), out_map)

        cost = pl.CostEstimate(
            flops=13 * n,
            transcendentals=2 * n,
            bytes_accessed=2 * n * itemsize + nc * acc_rows * _LANES * 4,
        )

        kernel = partial(_linex_kernel, a=a, valid_rows=rows, bpc=bpc,
                         two_core=two_core, needs_mask=needs_mask,
                         acc_rows=acc_rows)

        return pl.pallas_call(
            kernel,
            out_shape=jax.ShapeDtypeStruct((nc * acc_rows, _LANES), jnp.float32),
            grid_spec=pltpu.PrefetchScalarGridSpec(
                num_scalar_prefetch=0,
                grid=grid,
                in_specs=[in_spec, in_spec],
                out_specs=out_spec,
            ),
            compiler_params=pltpu.CompilerParams(
                dimension_semantics=sem,
                vmem_limit_bytes=_VMEM_LIMIT_BYTES),
            cost_estimate=cost,
        )(o2, t2)

    if ncores == 2:
        try:
            partials = run(True)
        except Exception:
            # Fall back to the single-core path if CORE_PARALLEL is rejected.
            partials = run(False)
    else:
        partials = run(False)

    # Epilogue: tiny cross-lane reduce of the f32 partials + mean over n.
    return jnp.sum(partials) / jnp.float32(n)


def _linex_loss_ref(output, target, a):
    a = float(a)
    o = output.astype(jnp.float32)
    t = target.astype(jnp.float32)
    u = a * t * (1.0 - o)
    v = a * t * o
    loss = (1.0 + t) * (jnp.exp(u) - u - 1.0) + (1.0 - t) * (jnp.exp(v) - v - 1.0)
    return jnp.mean(loss)


if __name__ == "__main__":
    a = 0.5  # deterministic module parameter (LinexLoss.__init__(a))
    key = jax.random.PRNGKey(0)

    # 1) Small NCHW example consistent with the module's elementwise forward.
    k1, k2 = jax.random.split(key)
    shape = (2, 4, 16, 16)
    output = jax.random.uniform(k1, shape, dtype=jnp.float32)          # predicted probs
    target = jax.random.bernoulli(k2, 0.5, shape).astype(jnp.float32)  # binary labels
    loss = jax.block_until_ready(linex_loss(output, target, a))
    ref = jax.block_until_ready(_linex_loss_ref(output, target, a))
    assert jnp.allclose(loss, ref, rtol=1e-5, atol=1e-6), (loss, ref)

    # 2) Larger single-block case (exercises the 32-row accumulator path).
    k3, k4 = jax.random.split(k2)
    shape2 = (2, 8, 96, 96)
    output2 = jax.random.uniform(k3, shape2, dtype=jnp.float32)
    target2 = jax.random.bernoulli(k4, 0.5, shape2).astype(jnp.float32)
    loss2 = jax.block_until_ready(linex_loss(output2, target2, a))
    ref2 = jax.block_until_ready(_linex_loss_ref(output2, target2, a))
    assert jnp.allclose(loss2, ref2, rtol=1e-5, atol=1e-6), (loss2, ref2)

    # 3) Ragged size + forced small blocks: exercises the multi-block grid,
    #    the zero-pad path and the masked partial tail block.
    k5, k6 = jax.random.split(k4)
    shape3 = (3, 5, 97, 41)
    output3 = jax.random.uniform(k5, shape3, dtype=jnp.float32)
    target3 = jax.random.bernoulli(k6, 0.5, shape3).astype(jnp.float32)
    loss3 = jax.block_until_ready(linex_loss(output3, target3, a, block_rows=64))
    ref3 = jax.block_until_ready(_linex_loss_ref(output3, target3, a))
    assert jnp.allclose(loss3, ref3, rtol=1e-5, atol=1e-6), (loss3, ref3)

    # 4) bf16 inputs (halved HBM traffic; in-kernel cast). Ref upcasts the same
    #    bf16 inputs, so only reduction order differs.
    output4 = output.astype(jnp.bfloat16)
    target4 = target.astype(jnp.bfloat16)
    loss4 = jax.block_until_ready(linex_loss(output4, target4, a))
    ref4 = jax.block_until_ready(_linex_loss_ref(output4, target4, a))
    assert jnp.allclose(loss4, ref4, rtol=1e-4, atol=1e-6), (loss4, ref4)

    print("KERNEL_OK")
</pallas_src>

<mosaic_0001>
module attributes {stable_mosaic.version = 11 : i64} {
  func.func @_linex_kernel(%arg0: i32, %arg1: memref<16x128xf32, #tpu.memory_space<vmem>>, %arg2: memref<16x128xf32, #tpu.memory_space<vmem>>, %arg3: memref<16x128xf32, #tpu.memory_space<vmem>>) attributes {dimension_semantics = [#tpu.dimension_semantics<arbitrary>], iteration_bounds = array<i64: 1>, scalar_prefetch = 0 : i64, scratch_operands = 0 : i64, tpu.core_type = #tpu.core_type<tc>, window_params = [{transform_indices = @transform_0, window_bounds = array<i64: 16, 128>}, {transform_indices = @transform_1, window_bounds = array<i64: 16, 128>}, {pipeline_mode = #tpu.pipeline_mode<synchronous>, transform_indices = @transform_2, window_bounds = array<i64: 16, 128>}]} {
    %c0_i32 = arith.constant 0 : i32
    %0 = arith.cmpi eq, %arg0, %c0_i32 : i32
    %1 = arith.extui %0 : i1 to i32
    %c0_i32_0 = arith.constant 0 : i32
    %2 = arith.cmpi ne, %1, %c0_i32_0 : i32
    scf.if %2 {
      %cst_13 = arith.constant 0.000000e+00 : f32
      %30 = vector.broadcast %cst_13 : f32 to vector<16x128xf32>
      %c0_14 = arith.constant 0 : index
      %c0_15 = arith.constant 0 : index
      %31 = vector.load %arg3[%c0_14, %c0_15] : memref<16x128xf32, #tpu.memory_space<vmem>>, vector<16x128xf32>
      tpu.vector_store %arg3[%c0_14, %c0_15], %30 {strides = array<i32>} : memref<16x128xf32, #tpu.memory_space<vmem>>, vector<16x128xf32>,
    } else {
    }
    %c0 = arith.constant 0 : index
    %c0_1 = arith.constant 0 : index
    %3 = vector.load %arg1[%c0, %c0_1] : memref<16x128xf32, #tpu.memory_space<vmem>>, vector<16x128xf32>
    %c0_2 = arith.constant 0 : index
    %c0_3 = arith.constant 0 : index
    %4 = vector.load %arg2[%c0_2, %c0_3] : memref<16x128xf32, #tpu.memory_space<vmem>>, vector<16x128xf32>
    %cst = arith.constant 1.000000e+00 : f32
    %5 = vector.broadcast %cst : f32 to vector<16x128xf32>
    %6 = arith.addf %5, %4 : vector<16x128xf32>
    %cst_4 = arith.constant 1.000000e+00 : f32
    %7 = vector.broadcast %cst_4 : f32 to vector<16x128xf32>
    %8 = arith.subf %7, %4 : vector<16x128xf32>
    %cst_5 = arith.constant 5.000000e-01 : f32
    %9 = vector.broadcast %cst_5 : f32 to vector<16x128xf32>
    %10 = arith.mulf %9, %4 : vector<16x128xf32>
    %11 = arith.mulf %10, %3 : vector<16x128xf32>
    %12 = arith.subf %10, %11 : vector<16x128xf32>
    %cst_6 = arith.constant 4.000000e+00 : f32
    %13 = vector.broadcast %cst_6 : f32 to vector<16x128xf32>
    %14 = arith.mulf %13, %11 : vector<16x128xf32>
    %15 = arith.subf %6, %14 : vector<16x128xf32>
    %16 = arith.mulf %10, %15 : vector<16x128xf32>
    %17 = math.exp %12 : vector<16x128xf32>
    %18 = arith.mulf %6, %17 : vector<16x128xf32>
    %19 = math.exp %11 : vector<16x128xf32>
    %20 = arith.mulf %8, %19 : vector<16x128xf32>
    %21 = arith.addf %18, %20 : vector<16x128xf32>
    %cst_7 = arith.constant 2.000000e+00 : f32
    %22 = vector.broadcast %cst_7 : f32 to vector<16x128xf32>
    %23 = arith.addf %16, %22 : vector<16x128xf32>
    %24 = arith.subf %21, %23 : vector<16x128xf32>
    %c0_8 = arith.constant 0 : index
    %c0_9 = arith.constant 0 : index
    %25 = vector.load %arg3[%c0_8, %c0_9] : memref<16x128xf32, #tpu.memory_space<vmem>>, vector<16x128xf32>
    %26 = vector.shape_cast %24 : vector<16x128xf32> to vector<1x16x128xf32>
    %cst_10 = arith.constant dense<0.000000e+00> : vector<16x128xf32>
    %27 = vector.multi_reduction <add>, %26, %cst_10 [0] : vector<1x16x128xf32> to vector<16x128xf32>
    %28 = arith.addf %25, %27 : vector<16x128xf32>
    %c0_11 = arith.constant 0 : index
    %c0_12 = arith.constant 0 : index
    %29 = vector.load %arg3[%c0_11, %c0_12] : memref<16x128xf32, #tpu.memory_space<vmem>>, vector<16x128xf32>
    tpu.vector_store %arg3[%c0_11, %c0_12], %28 {strides = array<i32>} : memref<16x128xf32, #tpu.memory_space<vmem>>, vector<16x128xf32>,
    return
  }
  func.func @transform_0(%arg0: i32) -> (i32, i32) {
    %c0_i32 = arith.constant 0 : i32
    %c0_i32_0 = arith.constant 0 : i32
    return %arg0, %c0_i32 : i32, i32
  }
  func.func @transform_1(%arg0: i32) -> (i32, i32) {
    %c0_i32 = arith.constant 0 : i32
    %c0_i32_0 = arith.constant 0 : i32
    return %arg0, %c0_i32 : i32, i32
  }
  func.func @transform_2(%arg0: i32) -> (i32, i32) {
    %c0_i32 = arith.constant 0 : i32
    %c0_i32_0 = arith.constant 0 : i32
    %c0_i32_1 = arith.constant 0 : i32
    return %c0_i32, %c0_i32_0 : i32, i32
  }
}

</mosaic_0001>

<bundles_post_ra>
// kernel: tpu_custom_call.1
= control target key start
LH: loop header
LB: loop body
LE: loop exit
PB: predicated region body
PF: predicated region fallthrough
CT: control target
= control target key end

     0   :  { %7 = vsyncpa [#allocation3], 0  ;;  %s261_s0 = inlined_call_operand.hbm [shape: f32[16,128], index: 0, kind: input, shape index: {}]   ;;  %s262_s1 = inlined_call_operand.hbm [shape: f32[16,128], index: 1, kind: input, shape index: {}]   ;;  %s263_s2 = inlined_call_operand.hbm [shape: f32[16,128], index: 2, kind: output, shape index: {}]  }
   0x1   :  { %8 = vsyncpa [#allocation6], 0 }
   0x2   :  { %9 = vsyncpa [#allocation4], 0  ;;  %s196_s9 = smov [#allocation2]   ;;  %s124_s13 = scalar_lea.hbm %s261_s0, 256 }
   0x3   :  { %s15_s10 = sshll.u32 %s196_s9, 4  ;;  %p125_p0 = scmp.ne.s32.totalorder %s261_s0, %s124_s13  ;;  %s16_s10 = int_to_ptr.vmem [resolvable:$true] %s15_s10 }
   0x4   :  { %p128_p1 = scmp.lt.u32.totalorder %s124_s13, %s261_s0 }
   0x6   :  { %p130_p2 = pnand %p128_p1, %p125_p0 }
   0x8   :  { %133 = shalt.err (!%p130_p2)
}
   0x9   :  { %s134_s18 = scalar_lea.vmem %s16_s10, 256  ;;  %p139_p4 = scmp.lt.s32.totalorder %s16_s10, %s16_s10 }
   0xa   :  { %p135_p3 = scmp.ne.s32.totalorder %s16_s10, %s134_s18  ;;  %p140_p5 = scmp.lt.s32.totalorder %s134_s18, %s134_s18 }
   0xc   :  { %p141_p6 = por %p140_p5, %p139_p4 }
   0xe   :  { %p142_p7 = pnand %p141_p6, %p135_p3 }
  0x10   :  { %145 = shalt.err (!%p142_p7)
}
  0x11   :  { %s197_s19 = smov 128   ;;  %s198_s20 = smov 8  }
  0x12   :  { %21 = dma.hbm_to_vmem [thread:$0]  %s261_s0, 256, %s16_s10, [#allocation3], %s197_s19, %s197_s19, %s198_s20  }
  0x13   :  { %s199_s23 = smov [#allocation5]   ;;  %s146_s27 = scalar_lea.hbm %s262_s1, 256 }
  0x14   :  { %s27_s24 = sshll.u32 %s199_s23, 4  ;;  %p147_p8 = scmp.ne.s32.totalorder %s262_s1, %s146_s27  ;;  %s28_s24 = int_to_ptr.vmem [resolvable:$true] %s27_s24 }
  0x15   :  { %p150_p9 = scmp.lt.u32.totalorder %s146_s27, %s262_s1 }
  0x17   :  { %p152_p10 = pnand %p150_p9, %p147_p8 }
  0x19   :  { %155 = shalt.err (!%p152_p10)
}
  0x1a   :  { %s156_s4 = scalar_lea.vmem %s28_s24, 256  ;;  %p161_p12 = scmp.lt.s32.totalorder %s28_s24, %s28_s24 }
  0x1b   :  { %p157_p11 = scmp.ne.s32.totalorder %s28_s24, %s156_s4  ;;  %p162_p13 = scmp.lt.s32.totalorder %s156_s4, %s156_s4 }
  0x1d   :  { %p163_p0 = por %p162_p13, %p161_p12 }
  0x1f   :  { %p164_p1 = pnand %p163_p0, %p157_p11 }
  0x21   :  { %167 = shalt.err (!%p164_p1)
}
  0x22   :  { %33 = dma.hbm_to_vmem [thread:$0]  %s262_s1, 256, %s28_s24, [#allocation6], %s197_s19, %s197_s19, %s198_s20  }
  0x23   :  { %190 = dma.done.wait [#allocation3], 256  }
  0x24   :  { %191 = vsyncadd [#allocation3], 4294967040 }
  0x25   :  { %192 = dma.done.wait [#allocation6], 256  }
  0x26   :  { %193 = vsyncadd [#allocation6], 4294967040  ;;  %v46_v0 = vld [vmem:[#allocation2] sm:$0xff]  ;;  %v48_v1 = vld [vmem:[#allocation5] sm:$0xff]  ;;  %s200_s1 = smov [#allocation7]  }
  0x27   :  { %v54_v2 = vmul.f32 0.5, %v48_v1  ;;  %v47_v3 = vld [vmem:[#allocation2 + $0x8] sm:$0xff]  ;;  %v49_v4 = vld [vmem:[#allocation5 + $0x8] sm:$0xff]  ;;  %v50_v13 = vadd.f32 1.0, %v48_v1  ;;  %v52_v20 = vsub.f32 1.0, %v48_v1  ;;  %s97_s6 = sshll.u32 %s200_s1, 4  ;;  %s98_s6 = int_to_ptr.vmem [resolvable:$true] %s97_s6 }
  0x28   :  { %v55_v5 = vmul.f32 0.5, %v49_v4  ;;  %v51_v16 = vadd.f32 1.0, %v49_v4  ;;  %v53_v21 = vsub.f32 1.0, %v49_v4  ;;  %s168_s7 = scalar_lea.vmem %s98_s6, 256  ;;  %p173_p3 = scmp.lt.s32.totalorder %s98_s6, %s98_s6 }
  0x29   :  { %v56_v6 = vmul.f32 %v54_v2, %v46_v0  ;;  %p169_p2 = scmp.ne.s32.totalorder %s98_s6, %s168_s7  ;;  %p174_p4 = scmp.lt.s32.totalorder %s168_s7, %s168_s7 }
  0x2a   :  { %v57_v7 = vmul.f32 %v55_v5, %v47_v3 }
  0x2b   :  { %v58_v8 = vsub.f32 %v54_v2, %v56_v6  ;;  %v72_v9 = vmul.f32 1.442695, %v56_v6  ;;  %v60_v14 = vmul.f32 4.0, %v56_v6  ;;  %p175_p5 = por %p174_p4, %p173_p3 }
  0x2c   :  { %v59_v10 = vsub.f32 %v55_v5, %v57_v7  ;;  %v74_v11 = vmul.f32 1.442695, %v57_v7  ;;  %v61_v17 = vmul.f32 4.0, %v57_v7 }
  0x2d   :  { %v66_v12 = vmul.f32 1.442695, %v58_v8  ;;  %116 = vpow2.f32 %v72_v9  ;;  %v62_v18 = vsub.f32 %v50_v13, %v60_v14  ;;  %p176_p6 = pnand %p175_p5, %p169_p2 }
  0x2e   :  { %v68_v15 = vmul.f32 1.442695, %v59_v10  ;;  %118 = vpow2.f32 %v74_v11  ;;  %v63_v19 = vsub.f32 %v51_v16, %v61_v17 }
  0x2f   :  { %120 = vpow2.f32 %v66_v12  ;;  %v64_v22 = vmul.f32 %v62_v18, %v54_v2 }
  0x30   :  { %122 = vpow2.f32 %v68_v15  ;;  %v65_v24 = vmul.f32 %v63_v19, %v55_v5 }
  0x31   :  { %v80_v31 = vadd.f32 2.0, %v64_v22 }
  0x32   :  { %v81_v33 = vadd.f32 2.0, %v65_v24 }
  0x37   :  { %v117_v23 = vpop.eup %116 }
  0x38   :  { %v119_v25 = vpop.eup %118  ;;  %v76_v26 = vmul.f32 %v117_v23, %v52_v20 }
  0x39   :  { %v121_v27 = vpop.eup %120  ;;  %v77_v28 = vmul.f32 %v119_v25, %v53_v21 }
  0x3a   :  { %v123_v29 = vpop.eup %122  ;;  %v70_v30 = vmul.f32 %v121_v27, %v50_v13 }
  0x3b   :  { %v71_v32 = vmul.f32 %v123_v29, %v51_v16 }
  0x3c   :  { %v78_v34 = vadd.f32 %v76_v26, %v70_v30 }
  0x3d   :  { %v79_v35 = vadd.f32 %v77_v28, %v71_v32 }
  0x3e   :  { %v82_v36 = vsub.f32 %v78_v34, %v80_v31 }
  0x3f   :  { %v83_v37 = vsub.f32 %v79_v35, %v81_v33 }
  0x40   :  { %90 = vst [vmem:[#allocation7] sm:$0xff] %v82_v36 }
  0x41   :  { %91 = vst [vmem:[#allocation7 + $0x8] sm:$0xff] %v83_v37 }
  0x42   :  { %179 = shalt.err (!%p176_p6)
}
  0x43   :  { %s180_s10 = scalar_lea.hbm %s263_s2, 256 }
  0x44   :  { %p181_p7 = scmp.ne.s32.totalorder %s263_s2, %s180_s10  ;;  %p184_p8 = scmp.lt.u32.totalorder %s180_s10, %s263_s2 }
  0x46   :  { %p186_p9 = pnand %p184_p8, %p181_p7 }
  0x48   :  { %189 = shalt.err (!%p186_p9)
}
  0x49   :  { %103 = dma.vmem_to_hbm [thread:$0]  %s98_s6, 256, %s263_s2, [#allocation4], %s197_s19, %s197_s19, %s198_s20  }
  0x4a   :  { %194 = dma.done.wait [#allocation4], 256  }
  0x4b   :  { %195 = vsyncadd [#allocation4], 4294967040 }
  0x4c   :  { %107 = vsyncpa [#allocation3], 1 }
  0x4d   :  { %108 = vsyncpa [#allocation6], 1 }
  0x4e   :  { %109 = vsyncpa [#allocation4], 1 }

</bundles_post_ra>
